<compile_context>
chip_gen: v7x
topology: tpu7x:2x2x1
jax: 0.10.0
libtpu: 0.0.40
codegen_flags: <defaults>
</compile_context>

<pallas_src>
import jax
import jax.numpy as jnp
from jax.experimental import pallas as pl
from jax.experimental.pallas import tpu as pltpu

STATE_DIM = 3      # Pendulum-v1 observation dim
ACTION_DIM = 3
HIDDEN1 = 128
HIDDEN2 = 256
MAX_ACTION = 10.0


def actor_kernel(x_ref, w1_ref, b1_ref, w2_ref, b2_ref, w3_ref, b3_ref, o_ref):
    x = x_ref[...]                                   # (TB, 3)  f32
    w1 = w1_ref[...]                                 # (3, 128) f32

    # Layer 1 on the VPU: K=3 through the systolic array is almost pure pipeline
    # latency, so do 3 broadcast-FMAs instead and keep the MXU slot free.
    h1 = (b1_ref[...]
          + x[:, 0:1] * w1[0:1, :]
          + x[:, 1:2] * w1[1:2, :]
          + x[:, 2:3] * w1[2:3, :])                  # (TB, 128) f32
    h1 = jnp.maximum(h1, 0.0)                        # ReLU

    # Layer 2 on the MXU: bf16 inputs, f32 accumulation.
    h2 = jnp.dot(h1.astype(jnp.bfloat16), w2_ref[...],
                 preferred_element_type=jnp.float32) + b2_ref[...]   # (TB, 256)
    h2 = jnp.maximum(h2, 0.0)                        # ReLU

    # Layer 3 on the MXU: bf16 inputs, f32 accumulation.
    a = jnp.dot(h2.astype(jnp.bfloat16), w3_ref[...],
                preferred_element_type=jnp.float32) + b3_ref[...]    # (TB, 3)

    # Tanh runs on the EUP (otherwise idle), scale on the VPU; output is already f32.
    o_ref[...] = MAX_ACTION * jnp.tanh(a)


def _round_up(n: int, m: int) -> int:
    return ((n + m - 1) // m) * m


def actor_forward(state, params, *, block_b: int = 512):
    """state: (B, STATE_DIM) f32; params: dict of weights/biases (in,out)/(1,out)."""
    B = state.shape[0]
    w1, b1, w2, b2, w3, b3 = (params["w1"], params["b1"], params["w2"],
                              params["b2"], params["w3"], params["b3"])

    # Batch tile: multiple of 8 sublanes, capped at block_b; pad B to a multiple of it.
    tb = min(block_b, _round_up(B, 8))
    padded = _round_up(B, tb)
    if padded != B:
        state = jnp.pad(state, ((0, padded - B), (0, 0)))
    grid = (padded // tb,)

    # Weights/biases: full-array blocks with a constant index map -> VMEM-resident
    # across all batch tiles (no re-DMA per grid step).
    resident = lambda a: pl.BlockSpec(a.shape, lambda i: (0, 0))

    out = pl.pallas_call(
        actor_kernel,
        out_shape=jax.ShapeDtypeStruct((padded, ACTION_DIM), jnp.float32),
        grid=grid,
        in_specs=[
            pl.BlockSpec((tb, STATE_DIM), lambda i: (i, 0)),   # state: tiled on batch
            resident(w1), resident(b1),
            resident(w2), resident(b2),
            resident(w3), resident(b3),
        ],
        out_specs=pl.BlockSpec((tb, ACTION_DIM), lambda i: (i, 0)),
        compiler_params=pltpu.CompilerParams(
            dimension_semantics=("parallel",),    # lets v7x shard batch tiles across 2 TCs
            vmem_limit_bytes=32 << 20,
        ),
    )(state, w1, b1, w2, b2, w3, b3)
    return out[:B]


def init_params(key):
    """Deterministic init mimicking nn.Linear default: U(-1/sqrt(fan_in), 1/sqrt(fan_in)).

    w1/b1 stay f32 (layer 1 runs on the VPU); w2/w3 are stored bf16 for the MXU path
    and to halve their HBM->VMEM DMA; biases stay f32 (added post-accumulation).
    """
    ks = jax.random.split(key, 6)

    def lin(kw, kb, fan_in, fan_out, w_dtype):
        bound = 1.0 / jnp.sqrt(jnp.float32(fan_in))
        w = jax.random.uniform(kw, (fan_in, fan_out), jnp.float32, -bound, bound)
        b = jax.random.uniform(kb, (1, fan_out), jnp.float32, -bound, bound)
        return w.astype(w_dtype), b

    w1, b1 = lin(ks[0], ks[1], STATE_DIM, HIDDEN1, jnp.float32)
    w2, b2 = lin(ks[2], ks[3], HIDDEN1, HIDDEN2, jnp.bfloat16)
    w3, b3 = lin(ks[4], ks[5], HIDDEN2, ACTION_DIM, jnp.bfloat16)
    return {"w1": w1, "b1": b1, "w2": w2, "b2": b2, "w3": w3, "b3": b3}


def actor_reference(state, p):
    """Pure-JAX f32 reference (weights up-cast to f32)."""
    h1 = jnp.maximum(state @ p["w1"] + p["b1"], 0.0)
    h2 = jnp.maximum(h1 @ p["w2"].astype(jnp.float32) + p["b2"], 0.0)
    return MAX_ACTION * jnp.tanh(h2 @ p["w3"].astype(jnp.float32) + p["b3"])


if __name__ == "__main__":
    key = jax.random.PRNGKey(0)
    kp, kx = jax.random.split(key)
    params = init_params(kp)

    batch = 8
    state = jax.random.normal(kx, (batch, STATE_DIM), jnp.float32)

    out = actor_forward(state, params)
    out = jax.block_until_ready(out)

    ref = actor_reference(state, params)
    assert out.shape == (batch, ACTION_DIM)
    # bf16 activations/weights on the MXU path -> loosened tolerance vs f32 reference.
    assert jnp.allclose(out, ref, atol=5e-2, rtol=5e-2), "mismatch vs pure-JAX reference"
    print("KERNEL_OK")
</pallas_src>

<mosaic_0001>
module attributes {stable_mosaic.version = 11 : i64} {
  func.func @actor_kernel(%arg0: i32, %arg1: memref<8x3xf32, #tpu.memory_space<vmem>>, %arg2: memref<3x128xf32, #tpu.memory_space<vmem>>, %arg3: memref<1x128xf32, #tpu.memory_space<vmem>>, %arg4: memref<128x256xbf16, #tpu.memory_space<vmem>>, %arg5: memref<1x256xf32, #tpu.memory_space<vmem>>, %arg6: memref<256x3xbf16, #tpu.memory_space<vmem>>, %arg7: memref<1x3xf32, #tpu.memory_space<vmem>>, %arg8: memref<8x3xf32, #tpu.memory_space<vmem>>) attributes {dimension_semantics = [#tpu.dimension_semantics<parallel>], iteration_bounds = array<i64: 1>, scalar_prefetch = 0 : i64, scratch_operands = 0 : i64, tpu.core_type = #tpu.core_type<tc>, window_params = [{transform_indices = @transform_0, window_bounds = array<i64: 8, 3>}, {pipeline_mode = #tpu.pipeline_mode<synchronous>, transform_indices = @transform_1, window_bounds = array<i64: 3, 128>}, {pipeline_mode = #tpu.pipeline_mode<synchronous>, transform_indices = @transform_2, window_bounds = array<i64: 1, 128>}, {pipeline_mode = #tpu.pipeline_mode<synchronous>, transform_indices = @transform_3, window_bounds = array<i64: 128, 256>}, {pipeline_mode = #tpu.pipeline_mode<synchronous>, transform_indices = @transform_4, window_bounds = array<i64: 1, 256>}, {pipeline_mode = #tpu.pipeline_mode<synchronous>, transform_indices = @transform_5, window_bounds = array<i64: 256, 3>}, {pipeline_mode = #tpu.pipeline_mode<synchronous>, transform_indices = @transform_6, window_bounds = array<i64: 1, 3>}, {transform_indices = @transform_7, window_bounds = array<i64: 8, 3>}]} {
    %c0 = arith.constant 0 : index
    %c0_0 = arith.constant 0 : index
    %0 = vector.load %arg1[%c0, %c0_0] : memref<8x3xf32, #tpu.memory_space<vmem>>, vector<8x3xf32>
    %c0_1 = arith.constant 0 : index
    %c0_2 = arith.constant 0 : index
    %1 = vector.load %arg2[%c0_1, %c0_2] : memref<3x128xf32, #tpu.memory_space<vmem>>, vector<3x128xf32>
    %c0_3 = arith.constant 0 : index
    %c0_4 = arith.constant 0 : index
    %2 = vector.load %arg3[%c0_3, %c0_4] : memref<1x128xf32, #tpu.memory_space<vmem>>, vector<1x128xf32>
    %3 = vector.extract_strided_slice %0 {offsets = [0, 0], sizes = [8, 1], strides = [1, 1]} : vector<8x3xf32> to vector<8x1xf32>
    %4 = vector.extract_strided_slice %1 {offsets = [0, 0], sizes = [1, 128], strides = [1, 1]} : vector<3x128xf32> to vector<1x128xf32>
    %5 = vector.broadcast %3 : vector<8x1xf32> to vector<8x128xf32>
    %6 = vector.broadcast %4 : vector<1x128xf32> to vector<8x128xf32>
    %7 = arith.mulf %5, %6 : vector<8x128xf32>
    %8 = vector.broadcast %2 : vector<1x128xf32> to vector<8x128xf32>
    %9 = arith.addf %8, %7 : vector<8x128xf32>
    %10 = vector.extract_strided_slice %0 {offsets = [0, 1], sizes = [8, 1], strides = [1, 1]} : vector<8x3xf32> to vector<8x1xf32>
    %11 = vector.extract_strided_slice %1 {offsets = [1, 0], sizes = [1, 128], strides = [1, 1]} : vector<3x128xf32> to vector<1x128xf32>
    %12 = vector.broadcast %10 : vector<8x1xf32> to vector<8x128xf32>
    %13 = vector.broadcast %11 : vector<1x128xf32> to vector<8x128xf32>
    %14 = arith.mulf %12, %13 : vector<8x128xf32>
    %15 = arith.addf %9, %14 : vector<8x128xf32>
    %16 = vector.extract_strided_slice %0 {offsets = [0, 2], sizes = [8, 1], strides = [1, 1]} : vector<8x3xf32> to vector<8x1xf32>
    %17 = vector.extract_strided_slice %1 {offsets = [2, 0], sizes = [1, 128], strides = [1, 1]} : vector<3x128xf32> to vector<1x128xf32>
    %18 = vector.broadcast %16 : vector<8x1xf32> to vector<8x128xf32>
    %19 = vector.broadcast %17 : vector<1x128xf32> to vector<8x128xf32>
    %20 = arith.mulf %18, %19 : vector<8x128xf32>
    %21 = arith.addf %15, %20 : vector<8x128xf32>
    %cst = arith.constant 0.000000e+00 : f32
    %22 = vector.broadcast %cst : f32 to vector<8x128xf32>
    %23 = arith.maximumf %21, %22 : vector<8x128xf32>
    %24 = arith.truncf %23 : vector<8x128xf32> to vector<8x128xbf16>
    %c0_5 = arith.constant 0 : index
    %c0_6 = arith.constant 0 : index
    %25 = vector.load %arg4[%c0_5, %c0_6] : memref<128x256xbf16, #tpu.memory_space<vmem>>, vector<128x256xbf16>
    %cst_7 = arith.constant dense<0.000000e+00> : vector<8x256xf32>
    %26 = tpu.matmul %24, %25, %cst_7 {dimension_numbers = #tpu.dot_dimension_numbers<[1], [0], [0], [1], [0, 0, 1, 1], [], []>} : vector<8x128xbf16>, vector<128x256xbf16>, vector<8x256xf32> -> vector<8x256xf32>
    %c0_8 = arith.constant 0 : index
    %c0_9 = arith.constant 0 : index
    %27 = vector.load %arg5[%c0_8, %c0_9] : memref<1x256xf32, #tpu.memory_space<vmem>>, vector<1x256xf32>
    %28 = vector.broadcast %27 : vector<1x256xf32> to vector<8x256xf32>
    %29 = arith.addf %26, %28 : vector<8x256xf32>
    %cst_10 = arith.constant 0.000000e+00 : f32
    %30 = vector.broadcast %cst_10 : f32 to vector<8x256xf32>
    %31 = arith.maximumf %29, %30 : vector<8x256xf32>
    %32 = arith.truncf %31 : vector<8x256xf32> to vector<8x256xbf16>
    %c0_11 = arith.constant 0 : index
    %c0_12 = arith.constant 0 : index
    %33 = vector.load %arg6[%c0_11, %c0_12] : memref<256x3xbf16, #tpu.memory_space<vmem>>, vector<256x3xbf16>
    %cst_13 = arith.constant dense<0.000000e+00> : vector<8x3xf32>
    %34 = tpu.matmul %32, %33, %cst_13 {dimension_numbers = #tpu.dot_dimension_numbers<[1], [0], [0], [1], [0, 0, 1, 1], [], []>} : vector<8x256xbf16>, vector<256x3xbf16>, vector<8x3xf32> -> vector<8x3xf32>
    %c0_14 = arith.constant 0 : index
    %c0_15 = arith.constant 0 : index
    %35 = vector.load %arg7[%c0_14, %c0_15] : memref<1x3xf32, #tpu.memory_space<vmem>>, vector<1x3xf32>
    %36 = vector.broadcast %35 : vector<1x3xf32> to vector<8x3xf32>
    %37 = arith.addf %34, %36 : vector<8x3xf32>
    %38 = math.tanh %37 : vector<8x3xf32>
    %cst_16 = arith.constant 1.000000e+01 : f32
    %39 = vector.broadcast %cst_16 : f32 to vector<8x3xf32>
    %40 = arith.mulf %39, %38 : vector<8x3xf32>
    %c0_17 = arith.constant 0 : index
    %c0_18 = arith.constant 0 : index
    %41 = vector.load %arg8[%c0_17, %c0_18] : memref<8x3xf32, #tpu.memory_space<vmem>>, vector<8x3xf32>
    tpu.vector_store %arg8[%c0_17, %c0_18], %40 {strides = array<i32>} : memref<8x3xf32, #tpu.memory_space<vmem>>, vector<8x3xf32>,
    return
  }
  func.func @transform_0(%arg0: i32) -> (i32, i32) {
    %c0_i32 = arith.constant 0 : i32
    %c0_i32_0 = arith.constant 0 : i32
    return %arg0, %c0_i32 : i32, i32
  }
  func.func @transform_1(%arg0: i32) -> (i32, i32) {
    %c0_i32 = arith.constant 0 : i32
    %c0_i32_0 = arith.constant 0 : i32
    %c0_i32_1 = arith.constant 0 : i32
    return %c0_i32, %c0_i32_0 : i32, i32
  }
  func.func @transform_2(%arg0: i32) -> (i32, i32) {
    %c0_i32 = arith.constant 0 : i32
    %c0_i32_0 = arith.constant 0 : i32
    %c0_i32_1 = arith.constant 0 : i32
    return %c0_i32, %c0_i32_0 : i32, i32
  }
  func.func @transform_3(%arg0: i32) -> (i32, i32) {
    %c0_i32 = arith.constant 0 : i32
    %c0_i32_0 = arith.constant 0 : i32
    %c0_i32_1 = arith.constant 0 : i32
    return %c0_i32, %c0_i32_0 : i32, i32
  }
  func.func @transform_4(%arg0: i32) -> (i32, i32) {
    %c0_i32 = arith.constant 0 : i32
    %c0_i32_0 = arith.constant 0 : i32
    %c0_i32_1 = arith.constant 0 : i32
    return %c0_i32, %c0_i32_0 : i32, i32
  }
  func.func @transform_5(%arg0: i32) -> (i32, i32) {
    %c0_i32 = arith.constant 0 : i32
    %c0_i32_0 = arith.constant 0 : i32
    %c0_i32_1 = arith.constant 0 : i32
    return %c0_i32, %c0_i32_0 : i32, i32
  }
  func.func @transform_6(%arg0: i32) -> (i32, i32) {
    %c0_i32 = arith.constant 0 : i32
    %c0_i32_0 = arith.constant 0 : i32
    %c0_i32_1 = arith.constant 0 : i32
    return %c0_i32, %c0_i32_0 : i32, i32
  }
  func.func @transform_7(%arg0: i32) -> (i32, i32) {
    %c0_i32 = arith.constant 0 : i32
    %c0_i32_0 = arith.constant 0 : i32
    return %arg0, %c0_i32 : i32, i32
  }
}

</mosaic_0001>

<bundles_post_ra>
// kernel: tpu_custom_call.1
= control target key start
LH: loop header
LB: loop body
LE: loop exit
PB: predicated region body
PF: predicated region fallthrough
CT: control target
= control target key end

     0   :  { %v510_v0 = vmov 0   ;;  %v511_v2 = vmov 2   ;;  %v512_v7 = vmov 1   ;;  %v35_v32 = vlaneseq  ;;  %s667_s0 = inlined_call_operand.vmem [shape: f32[8,3], index: 0, kind: input, shape index: {}]   ;;  %s668_s3 = inlined_call_operand.vmem [shape: bf16[128,256], index: 3, kind: input, shape index: {}]   ;;  %s669_s5 = inlined_call_operand.vmem [shape: bf16[256,3], index: 5, kind: input, shape index: {}]   ;;  %s670_s1 = inlined_call_operand.vmem [shape: f32[3,128], index: 1, kind: input, shape index: {}]   ;;  %s671_s2 = inlined_call_operand.vmem [shape: f32[1,128], index: 2, kind: input, shape index: {}]   ;;  %s672_s4 = inlined_call_operand.vmem [shape: f32[1,256], index: 4, kind: input, shape index: {}]   ;;  %s673_s6 = inlined_call_operand.vmem [shape: f32[1,3], index: 6, kind: input, shape index: {}]   ;;  %s674_s7 = inlined_call_operand.vmem [shape: f32[8,3], index: 7, kind: output, shape index: {}]  }
   0x1   :  { %464 = vset.pattern.permute.xlu0 %v510_v0  ;;  %v27_v1 = vld [vmem:[%s667_s0] sm:$0xff]  ;;  %466 = vset.pattern.permute.xlu1 %v511_v2  ;;  %v471_v5 = vld [vmem:[%s668_s3 + $0x14] ss:$8 sps:$4 sm:$0xff]   ;;  %v473_v6 = vld [vmem:[%s668_s3 + $0x10] ss:$8 sps:$4 sm:$0xff]   ;;  %vm399_vm0 = vcmask 23552  }
   0x2   :  { %32 = vperm.xlu0 %464, %v27_v1   ;;  %58 = vperm.xlu1 %466, %v27_v1   ;;  %v468_v3 = vld [vmem:[%s668_s3 + $0x4] ss:$8 sps:$4 sm:$0xff]   ;;  %v470_v4 = vld [vmem:[%s668_s3] ss:$8 sps:$4 sm:$0xff]   ;;  %v477_v10 = vld [vmem:[%s668_s3 + $0x34] ss:$8 sps:$4 sm:$0xff]  }
   0x3   :  { %209 = vmatprep.mubr.bf16.mxu0 %v510_v0  ;;  %177 = vmatprep.subr.bf16.mxu0 %v468_v3  ;;  %v474_v8 = vld [vmem:[%s668_s3 + $0x24] ss:$8 sps:$4 sm:$0xff]   ;;  %v476_v9 = vld [vmem:[%s668_s3 + $0x20] ss:$8 sps:$4 sm:$0xff]   ;;  %v479_v11 = vld [vmem:[%s668_s3 + $0x30] ss:$8 sps:$4 sm:$0xff]  }
   0x4   :  { %178 = vmatpush1.bf16.msra.mxu0 %v470_v4  ;;  %v480_v12 = vld [vmem:[%s668_s3 + $0x44] ss:$8 sps:$4 sm:$0xff]   ;;  %v482_v13 = vld [vmem:[%s668_s3 + $0x40] ss:$8 sps:$4 sm:$0xff]   ;;  %v483_v14 = vld [vmem:[%s668_s3 + $0x54] ss:$8 sps:$4 sm:$0xff]  }
   0x5   :  { %179 = vmatprep.subr.bf16.mxu0 %v471_v5  ;;  %v492_v15 = vld [vmem:[%s669_s5 + $0x40] sm:$0xff]   ;;  %v485_v16 = vld [vmem:[%s668_s3 + $0x50] ss:$8 sps:$4 sm:$0xff]   ;;  %v494_v19 = vld [vmem:[%s669_s5 + $0x48] sm:$0xff]   ;;  %v36_v33 = vshrl.u32 %v35_v32, 7 }
   0x6   :  { %465 = vset.pattern.permute.xlu0 %v512_v7  ;;  %v493_v17 = vld [vmem:[%s669_s5] sm:$0xff]   ;;  %439 = vmatprep.subr.bf16.mxu1 %v492_v15  ;;  %v495_v20 = vld [vmem:[%s669_s5 + $0x8] sm:$0xff]   ;;  %v496_v21 = vld [vmem:[%s669_s5 + $0x50] sm:$0xff]  }
   0x7   :  { %48 = vperm.xlu0 %465, %v27_v1   ;;  %v486_v18 = vld [vmem:[%s668_s3 + $0x64] ss:$8 sps:$4 sm:$0xff]   ;;  %440 = vmatpush3.bf16.msra.mxu1 %v493_v17  ;;  %v488_v22 = vld [vmem:[%s668_s3 + $0x60] ss:$8 sps:$4 sm:$0xff]   ;;  %v489_v23 = vld [vmem:[%s668_s3 + $0x74] ss:$8 sps:$4 sm:$0xff]  }
   0x8   :  { %180 = vmatpush1.bf16.msra.mxu0 %v473_v6  ;;  %441 = vmatprep.subr.bf16.mxu1 %v494_v19  ;;  %v497_v24 = vld [vmem:[%s669_s5 + $0x10] sm:$0xff]   ;;  %v498_v25 = vld [vmem:[%s669_s5 + $0x58] sm:$0xff]   ;;  %v500_v28 = vld [vmem:[%s669_s5 + $0x60] sm:$0xff]   ;;  %v37_v34 = vsub.s32 0, %v36_v33  ;;  %v53_v37 = vsub.s32 1, %v36_v33  ;;  %v63_v38 = vsub.s32 2, %v36_v33 }
   0x9   :  { %181 = vmatprep.subr.bf16.mxu0 %v474_v8  ;;  %v491_v26 = vld [vmem:[%s668_s3 + $0x70] ss:$8 sps:$4 sm:$0xff]   ;;  %v501_v29 = vld [vmem:[%s669_s5 + $0x20] sm:$0xff]   ;;  %v502_v30 = vld [vmem:[%s669_s5 + $0x68] sm:$0xff]  }
   0xa   :  { %v499_v27 = vld [vmem:[%s669_s5 + $0x18] sm:$0xff]   ;;  %v503_v31 = vld [vmem:[%s669_s5 + $0x28] sm:$0xff]   ;;  %v28_v35 = vld [vmem:[%s670_s1] sm:$0x7] }
   0xb   :  { %467 = vset.pattern.permute.xlu0 %v511_v2  ;;  %442 = vmatpush3.bf16.msra.mxu1 %v495_v20  ;;  %v38_v36 = vrot.slane %v28_v35, %v37_v34  ;;  %v54_v41 = vrot.slane %v28_v35, %v53_v37  ;;  %v64_v42 = vrot.slane %v28_v35, %v63_v38  ;;  %v405_v43 = vld [vmem:[%s671_s2] ss:$0 sm:$0xff]  ;;  %v504_v53 = vld [vmem:[%s669_s5 + $0x70] sm:$0xff]   ;;  %v506_v55 = vld [vmem:[%s669_s5 + $0x78] sm:$0xff]  }
   0xc   :  { %182 = vmatpush1.bf16.msra.mxu0 %v476_v9  ;;  %443 = vmatprep.subr.bf16.mxu1 %v496_v21  ;;  %v505_v54 = vld [vmem:[%s669_s5 + $0x30] sm:$0xff]   ;;  %v507_v56 = vld [vmem:[%s669_s5 + $0x38] sm:$0xff]   ;;  %v85_v57 = vld [vmem:[%s672_s4] sm:$0x3] }
   0xd   :  { %183 = vmatprep.subr.bf16.mxu0 %v477_v10  ;;  %v90_v58 = vrot.slane %v85_v57, %v37_v34  ;;  %v94_v59 = vrot.slane %v85_v57, %v53_v37  ;;  %v422_v7 = vld [vmem:[%s673_s6] ss:$0 sm:$0xff] }
   0xf   :  { %444 = vmatpush3.bf16.msra.mxu1 %v497_v24 }
  0x10   :  { %184 = vmatpush1.bf16.msra.mxu0 %v479_v11  ;;  %445 = vmatprep.subr.bf16.mxu1 %v498_v25 }
  0x11   :  { %185 = vmatprep.subr.bf16.mxu0 %v480_v12 }
  0x13   :  { %446 = vmatpush3.bf16.msra.mxu1 %v499_v27 }
  0x14   :  { %186 = vmatpush1.bf16.msra.mxu0 %v482_v13  ;;  %447 = vmatprep.subr.bf16.mxu1 %v500_v28 }
  0x15   :  { %187 = vmatprep.subr.bf16.mxu0 %v483_v14 }
  0x17   :  { %448 = vmatpush3.bf16.msra.mxu1 %v501_v29 }
  0x18   :  { %188 = vmatpush1.bf16.msra.mxu0 %v485_v16  ;;  %449 = vmatprep.subr.bf16.mxu1 %v502_v30 }
  0x19   :  { %189 = vmatprep.subr.bf16.mxu0 %v486_v18 }
  0x1b   :  { %450 = vmatpush3.bf16.msra.mxu1 %v503_v31 }
  0x1c   :  { %190 = vmatpush1.bf16.msra.mxu0 %v488_v22  ;;  %451 = vmatprep.subr.bf16.mxu1 %v504_v53 }
  0x1d   :  { %191 = vmatprep.subr.bf16.mxu0 %v489_v23 }
  0x1f   :  { %452 = vmatpush3.bf16.msra.mxu1 %v505_v54 }
  0x20   :  { %192 = vmatpush1.bf16.msra.mxu0 %v491_v26  ;;  %453 = vmatprep.subr.bf16.mxu1 %v506_v55 }
  0x23   :  { %454 = vmatpush3.bf16.msra.mxu1 %v507_v56 }
  0x81   :  { %v33_v39 = vpop.permute.xlu0 %32  ;;  %v59_v44 = vpop.permute.xlu1 %58 }
  0x82   :  { %v39_v40 = vmul.f32 %v38_v36, %v33_v39  ;;  %v65_v48 = vmul.f32 %v64_v42, %v59_v44 }
  0x84   :  { %v46_v46 = vadd.f32 %v405_v43, %v39_v40 }
  0x86   :  { %v49_v45 = vpop.permute.xlu0 %48 }
  0x87   :  { %v55_v47 = vmul.f32 %v54_v41, %v49_v45 }
  0x89   :  { %v56_v49 = vadd.f32 %v55_v47, %v46_v46 }
  0x8b   :  { %v66_v50 = vadd.f32 %v65_v48, %v56_v49 }
  0x8d   :  { %v67_v51 = vmax.f32 %v66_v50, 0.0 }
  0x8f   :  { %v68_v52 = vpack.c.bf16 %v67_v51, %v67_v51 }
  0x91   :  { %210 = vmatmul.mubr.bf16.vlgmr.msra.gmra.mrb[0].mxu0 %v68_v52 }
 0x164   :  { %v211_v60 = vpop.f32.mrb[0].mxu0 }
 0x165   :  { %v212_v61 = vadd.f32 %v211_v60, %v90_v58  ;;  %v213_v62 = vpop.f32.mrb[1].mxu0 }
 0x166   :  { %v214_v63 = vadd.f32 %v213_v62, %v94_v59  ;;  %v215_v0 = vpop.f32.mrb[2].mxu0 }
 0x167   :  { %v218_v1 = vmax.f32 %v212_v61, 0.0  ;;  %v216_v2 = vpop.f32.mrb[3].mxu0 }
 0x168   :  { %v219_v3 = vmax.f32 %v214_v63, 0.0 }
 0x169   :  { %v220_v5 = vpack.c.bf16 %v218_v1, %v218_v1 }
 0x16a   :  { %v221_v4 = vpack.c.bf16 %v219_v3, %v219_v3 }
 0x16c   :  { %389 = vmatprep.mubr.bf16.mxu1 %v221_v4 }
 0x16d   :  { %390 = vmatmul.mubr.bf16.vlgmr.msra.gmra.mrb[0].mxu1 %v220_v5 }
 0x240   :  { %v455_v6 = vpop.f32.mrb[0].mxu1 }
 0x241   :  { %v456_v8 = vpop.f32.mrb[1].mxu1 }
 0x242   :  { %v457_v9 = vadd.f32 %v456_v8, %v455_v6  ;;  %v458_v10 = vpop.f32.mrb[2].mxu1 }
 0x243   :  { %v459_v11 = vpop.f32.mrb[3].mxu1 }
 0x244   :  { %v392_v12 = vadd.f32 %v457_v9, %v422_v7 }
 0x246   :  { %508 = vtanh.f32 %v392_v12 }
 0x250   :  { %v509_v13 = vpop.eup %508 }
 0x251   :  { %v398_v14 = vmul.f32 10.0, %v509_v13 }
 0x253   :  { %400 = vst.msk [vmem:[%s674_s7] sm:$0xff] %vm399_vm0, %v398_v14 }

</bundles_post_ra>
